<compile_context>
chip_gen: v7x
topology: tpu7x:2x2x1
jax: 0.10.0
libtpu: 0.0.40
codegen_flags: <defaults>
</compile_context>

<pallas_src>
import numpy as np
import jax
import jax.numpy as jnp
from jax.experimental import pallas as pl
from jax.experimental.pallas import tpu as pltpu


NUM_LAYERS = 5


def rnn_model_kernel(x2d_ref,    # (T*Bp, I)    f32, timestep-major, batch padded to 8
                     wih0_ref,   # (I, H)       weight dtype, layer-0 Wih^T
                     wbig_ref,   # (NL*H,NL*H)  weight dtype, block-bidiagonal recurrence
                     bbig_ref,   # (1, NL*H)    f32 stacked biases (b_ih + b_hh per layer)
                     mask_ref,   # (NL-1, NL*H) f32 wavefront warm-up masks
                     combo_ref,  # (T, H)       f32 fused head weights fc2_w[t] * fc1_w
                     const_ref,  # (1,)         f32 in SMEM: fc1_b*sum(fc2_w) + fc2_b
                     out_ref,    # (Bp, 1)      f32
                     xproj_ref): # (T*Bp, NL*H) f32 VMEM scratch
    TB, NLH = xproj_ref.shape
    T, H = combo_ref.shape
    NL = NLH // H
    B = TB // T
    wdt = wbig_ref.dtype

    # Hoisted layer-0 input projection for all timesteps, staged in VMEM so
    # only the current step's (Bp, NLH) slab is ever live in vregs.  Only the
    # first H lanes (layer-0 block) are non-zero.
    xproj_ref[...] = jnp.zeros((TB, NLH), jnp.float32)
    xproj_ref[:, :H] = jnp.dot(x2d_ref[...].astype(wdt), wih0_ref[...],
                               preferred_element_type=jnp.float32)

    state = jnp.zeros((B, NLH), jnp.float32)   # stacked per-layer hidden states
    acc = jnp.zeros((B, H), jnp.float32)       # fused fc1/fc2 accumulator

    # Wavefront: at step s, layer l advances to timestep s - l; all NL layer
    # updates are independent and share one block-bidiagonal matmul.
    for s in range(T + NL - 1):
        pre = (jnp.dot(state.astype(wdt), wbig_ref[...],
                       preferred_element_type=jnp.float32)
               + bbig_ref[...])
        if s < T:
            pre = pre + xproj_ref[s * B:(s + 1) * B, :]   # sublane-aligned slab
        state = jnp.tanh(pre)                              # f32 EUP path (v5e-safe)
        if s < NL - 1:
            # warm-up: layers l > s have not started yet; keep their blocks at 0
            state = state * mask_ref[s:s + 1, :]
        t_top = s - (NL - 1)                   # timestep the top layer produced
        if 0 <= t_top < T:
            h_top = state[:, (NL - 1) * H:]                    # (Bp, H), lane-aligned
            acc = acc + h_top * combo_ref[t_top:t_top + 1, :]  # fused fc1*fc2_w[t]

    out_ref[...] = jnp.sum(acc, axis=-1, keepdims=True) + const_ref[0]


def rnn_model_forward(x, params):
    """x: (B, T, I) float32 -> (B,) float32 (matches RNNModel.forward)."""
    B, T, I = x.shape
    H = params["combo"].shape[1]
    NL = NUM_LAYERS
    NLH = NL * H
    Bp = ((B + 7) // 8) * 8                      # pad batch to sublane width (8)

    # timestep-major flatten + zero-padded batch so per-step rows are an
    # aligned, contiguous slab.
    # TODO(synk): at scale, feed x timestep-major (or express the reorder via a
    # BlockSpec index_map) instead of materializing this transpose in XLA.
    xt = jnp.transpose(x, (1, 0, 2))             # (T, B, I)
    xt = jnp.pad(xt, ((0, 0), (0, Bp - B), (0, 0)))
    x2d = xt.reshape(T * Bp, I)

    flops = (2 * T * Bp * I * H                   # hoisted input projection
             + 2 * (T + NL - 1) * Bp * NLH * NLH  # wavefront recurrence matmuls
             + 3 * T * Bp * H)                    # fused head accumulation
    transcendentals = (T + NL - 1) * Bp * NLH     # tanh
    bytes_accessed = (4 * int(x2d.size + params["bbig"].size + params["mask"].size
                              + params["combo"].size + params["const"].size + Bp)
                      + int(params["wih0"].size * params["wih0"].dtype.itemsize)
                      + int(params["wbig"].size * params["wbig"].dtype.itemsize))

    vmem = pl.BlockSpec(memory_space=pltpu.MemorySpace.VMEM)
    smem = pl.BlockSpec(memory_space=pltpu.MemorySpace.SMEM)

    out = pl.pallas_call(
        rnn_model_kernel,
        out_shape=jax.ShapeDtypeStruct((Bp, 1), jnp.float32),
        in_specs=[vmem, vmem, vmem, vmem, vmem, vmem, smem],
        out_specs=vmem,
        scratch_shapes=[pltpu.VMEM((T * Bp, NLH), jnp.float32)],
        cost_estimate=pl.CostEstimate(flops=flops,
                                      transcendentals=transcendentals,
                                      bytes_accessed=bytes_accessed),
    )(x2d, params["wih0"], params["wbig"], params["bbig"],
      params["mask"], params["combo"], params["const"])
    return out[:B, 0]


def init_params(key, input_size, hidden_size, sequence_length,
                weight_dtype=jnp.bfloat16):
    """Deterministic init mirroring the PyTorch parameter shapes/ranges,
    repacked into the wavefront / fused-head layout used by the kernel."""
    H, I, T = hidden_size, input_size, sequence_length
    NL = NUM_LAYERS
    NLH = NL * H
    k_rnn = 1.0 / np.sqrt(H)
    keys = iter(jax.random.split(key, 4 * NL + 4))

    def unif(k, shape, bound):
        return jax.random.uniform(k, shape, jnp.float32, -bound, bound)

    wih, whh, b_ih, b_hh = [], [], [], []
    for layer in range(NL):
        in_dim = I if layer == 0 else H
        wih.append(unif(next(keys), (H, in_dim), k_rnn))
        whh.append(unif(next(keys), (H, H), k_rnn))
        b_ih.append(unif(next(keys), (H,), k_rnn))
        b_hh.append(unif(next(keys), (H,), k_rnn))

    fc1_w = unif(next(keys), (1, H), 1.0 / np.sqrt(H))
    fc1_b = unif(next(keys), (1,), 1.0 / np.sqrt(H))
    fc2_w = unif(next(keys), (1, T), 1.0 / np.sqrt(T))
    fc2_b = unif(next(keys), (1,), 1.0 / np.sqrt(T))

    # layer-0 input weights, transposed (narrow — no zero padding)
    wih0 = wih[0].T.astype(weight_dtype)                        # (I, H)

    # block-bidiagonal recurrence matrix for state @ W_big:
    #   output block l  <-  input block l   @ Whh_l^T   (diagonal)
    #   output block l  <-  input block l-1 @ Wih_l^T   (sub-diagonal, l >= 1)
    wbig = jnp.zeros((NLH, NLH), jnp.float32)
    for l in range(NL):
        wbig = wbig.at[l * H:(l + 1) * H, l * H:(l + 1) * H].set(whh[l].T)
        if l >= 1:
            wbig = wbig.at[(l - 1) * H:l * H, l * H:(l + 1) * H].set(wih[l].T)
    wbig = wbig.astype(weight_dtype)

    bbig = jnp.concatenate([b_ih[l] + b_hh[l] for l in range(NL)]).reshape(1, NLH)

    # warm-up masks: at wavefront step s < NL-1 only blocks 0..s are live
    mask_np = np.zeros((NL - 1, NLH), np.float32)
    for s in range(NL - 1):
        mask_np[s, :(s + 1) * H] = 1.0
    mask = jnp.asarray(mask_np)

    # fused fc1/fc2 head:
    #   out[b] = sum_t fc2_w[t] * (fc1_w . h_top_t[b] + fc1_b) + fc2_b
    #          = sum_{t,j} combo[t, j] * h_top_t[b, j] + const
    combo = (fc2_w.reshape(T, 1) * fc1_w.reshape(1, H)).astype(jnp.float32)
    const = (fc1_b[0] * jnp.sum(fc2_w) + fc2_b[0]).reshape(1)

    return {
        "wih0": wih0,           # (I, H)        weight dtype
        "wbig": wbig,           # (NL*H, NL*H)  weight dtype
        "bbig": bbig,           # (1, NL*H)     f32
        "mask": mask,           # (NL-1, NL*H)  f32
        "combo": combo,         # (T, H)        f32
        "const": const,         # (1,)          f32 (SMEM)
        # raw copies for the pure-JAX reference
        "_raw": (wih, whh, b_ih, b_hh, fc1_w, fc1_b, fc2_w, fc2_b),
    }


def reference_forward(x, params):
    """Pure-JAX reference replicating PyTorch nn.RNN / Linear semantics
    (f32 weights, highest matmul precision)."""
    wih, whh, b_ih, b_hh, fc1_w, fc1_b, fc2_w, fc2_b = params["_raw"]
    B, T, _ = x.shape
    H = whh[0].shape[0]
    hi = jax.lax.Precision.HIGHEST
    cur = x
    for layer in range(NUM_LAYERS):
        h = jnp.zeros((B, H), jnp.float32)
        outs = []
        for t in range(T):
            h = jnp.tanh(jnp.dot(cur[:, t, :], wih[layer].T, precision=hi)
                         + jnp.dot(h, whh[layer].T, precision=hi)
                         + b_ih[layer] + b_hh[layer])
            outs.append(h)
        cur = jnp.stack(outs, axis=1)
    y1 = jnp.dot(cur, fc1_w.T, precision=hi)[..., 0] + fc1_b[0]   # (B, T)
    y2 = jnp.dot(y1, fc2_w.T, precision=hi)[..., 0] + fc2_b[0]    # (B,)
    return y2


if __name__ == "__main__":
    input_size, hidden_size, sequence_length, batch = 4, 32, 8, 2

    key = jax.random.PRNGKey(0)
    kx, kp = jax.random.split(key)
    x = jax.random.normal(kx, (batch, sequence_length, input_size), jnp.float32)

    # f32-weight path: tightened tolerance (structural/indexing bugs give O(1)
    # errors; 1e-3 keeps margin for MXU vs XLA f32 accumulation differences).
    params_f32 = init_params(kp, input_size, hidden_size, sequence_length,
                             weight_dtype=jnp.float32)
    out_f32 = jax.block_until_ready(rnn_model_forward(x, params_f32))
    ref = reference_forward(x, params_f32)
    np.testing.assert_allclose(np.asarray(out_f32), np.asarray(ref),
                               rtol=1e-3, atol=1e-3)

    # bf16-weight fast path (MXU-native on v6e/v7x): looser tolerance because
    # bf16 rounding compounds through 8 timesteps x 5 layers of tanh.
    params_bf16 = init_params(kp, input_size, hidden_size, sequence_length,
                              weight_dtype=jnp.bfloat16)
    out_bf16 = jax.block_until_ready(rnn_model_forward(x, params_bf16))
    np.testing.assert_allclose(np.asarray(out_bf16), np.asarray(ref),
                               rtol=2e-2, atol=2e-2)

    assert out_f32.shape == (batch,) and out_bf16.shape == (batch,)
    print("KERNEL_OK")
</pallas_src>

<mosaic_0001>
module attributes {stable_mosaic.version = 11 : i64} {
  func.func @rnn_model_kernel(%arg0: memref<64x4xf32, #tpu.memory_space<vmem>>, %arg1: memref<4x32xf32, #tpu.memory_space<vmem>>, %arg2: memref<160x160xf32, #tpu.memory_space<vmem>>, %arg3: memref<1x160xf32, #tpu.memory_space<vmem>>, %arg4: memref<4x160xf32, #tpu.memory_space<vmem>>, %arg5: memref<8x32xf32, #tpu.memory_space<vmem>>, %arg6: memref<1xf32, #tpu.memory_space<smem>>, %arg7: memref<8x1xf32, #tpu.memory_space<vmem>>, %arg8: memref<64x160xf32, #tpu.memory_space<vmem>>) attributes {dimension_semantics = [], scalar_prefetch = 0 : i64, scratch_operands = 1 : i64, tpu.core_type = #tpu.core_type<tc>} {
    %cst = arith.constant 0.000000e+00 : f32
    %0 = vector.broadcast %cst : f32 to vector<64x160xf32>
    %c0 = arith.constant 0 : index
    %c0_0 = arith.constant 0 : index
    %1 = vector.load %arg8[%c0, %c0_0] : memref<64x160xf32, #tpu.memory_space<vmem>>, vector<64x160xf32>
    tpu.vector_store %arg8[%c0, %c0_0], %0 {strides = array<i32>} : memref<64x160xf32, #tpu.memory_space<vmem>>, vector<64x160xf32>,
    %c0_1 = arith.constant 0 : index
    %c0_2 = arith.constant 0 : index
    %2 = vector.load %arg0[%c0_1, %c0_2] : memref<64x4xf32, #tpu.memory_space<vmem>>, vector<64x4xf32>
    %c0_3 = arith.constant 0 : index
    %c0_4 = arith.constant 0 : index
    %3 = vector.load %arg1[%c0_3, %c0_4] : memref<4x32xf32, #tpu.memory_space<vmem>>, vector<4x32xf32>
    %cst_5 = arith.constant dense<0.000000e+00> : vector<64x32xf32>
    %4 = tpu.matmul %2, %3, %cst_5 {dimension_numbers = #tpu.dot_dimension_numbers<[1], [0], [0], [1], [0, 0, 1, 1], [], []>} : vector<64x4xf32>, vector<4x32xf32>, vector<64x32xf32> -> vector<64x32xf32>
    %c0_6 = arith.constant 0 : index
    %c0_7 = arith.constant 0 : index
    %5 = vector.load %arg8[%c0_6, %c0_7] : memref<64x160xf32, #tpu.memory_space<vmem>>, vector<64x32xf32>
    tpu.vector_store %arg8[%c0_6, %c0_7], %4 {strides = array<i32>} : memref<64x160xf32, #tpu.memory_space<vmem>>, vector<64x32xf32>,
    %cst_8 = arith.constant 0.000000e+00 : f32
    %6 = vector.broadcast %cst_8 : f32 to vector<8x160xf32>
    %cst_9 = arith.constant 0.000000e+00 : f32
    %7 = vector.broadcast %cst_9 : f32 to vector<8x32xf32>
    %c0_10 = arith.constant 0 : index
    %c0_11 = arith.constant 0 : index
    %8 = vector.load %arg2[%c0_10, %c0_11] : memref<160x160xf32, #tpu.memory_space<vmem>>, vector<160x160xf32>
    %cst_12 = arith.constant dense<0.000000e+00> : vector<8x160xf32>
    %9 = tpu.matmul %6, %8, %cst_12 {dimension_numbers = #tpu.dot_dimension_numbers<[1], [0], [0], [1], [0, 0, 1, 1], [], []>} : vector<8x160xf32>, vector<160x160xf32>, vector<8x160xf32> -> vector<8x160xf32>
    %c0_13 = arith.constant 0 : index
    %c0_14 = arith.constant 0 : index
    %10 = vector.load %arg3[%c0_13, %c0_14] : memref<1x160xf32, #tpu.memory_space<vmem>>, vector<1x160xf32>
    %11 = vector.broadcast %10 : vector<1x160xf32> to vector<8x160xf32>
    %12 = arith.addf %9, %11 : vector<8x160xf32>
    %c0_15 = arith.constant 0 : index
    %c0_16 = arith.constant 0 : index
    %13 = vector.load %arg8[%c0_15, %c0_16] : memref<64x160xf32, #tpu.memory_space<vmem>>, vector<8x160xf32>
    %14 = arith.addf %12, %13 : vector<8x160xf32>
    %15 = math.tanh %14 : vector<8x160xf32>
    %c0_17 = arith.constant 0 : index
    %c0_18 = arith.constant 0 : index
    %16 = vector.load %arg4[%c0_17, %c0_18] : memref<4x160xf32, #tpu.memory_space<vmem>>, vector<1x160xf32>
    %17 = vector.broadcast %16 : vector<1x160xf32> to vector<8x160xf32>
    %18 = arith.mulf %15, %17 : vector<8x160xf32>
    %c0_19 = arith.constant 0 : index
    %c0_20 = arith.constant 0 : index
    %19 = vector.load %arg2[%c0_19, %c0_20] : memref<160x160xf32, #tpu.memory_space<vmem>>, vector<160x160xf32>
    %cst_21 = arith.constant dense<0.000000e+00> : vector<8x160xf32>
    %20 = tpu.matmul %18, %19, %cst_21 {dimension_numbers = #tpu.dot_dimension_numbers<[1], [0], [0], [1], [0, 0, 1, 1], [], []>} : vector<8x160xf32>, vector<160x160xf32>, vector<8x160xf32> -> vector<8x160xf32>
    %c0_22 = arith.constant 0 : index
    %c0_23 = arith.constant 0 : index
    %21 = vector.load %arg3[%c0_22, %c0_23] : memref<1x160xf32, #tpu.memory_space<vmem>>, vector<1x160xf32>
    %22 = vector.broadcast %21 : vector<1x160xf32> to vector<8x160xf32>
    %23 = arith.addf %20, %22 : vector<8x160xf32>
    %c8 = arith.constant 8 : index
    %c0_24 = arith.constant 0 : index
    %24 = vector.load %arg8[%c8, %c0_24] : memref<64x160xf32, #tpu.memory_space<vmem>>, vector<8x160xf32>
    %25 = arith.addf %23, %24 : vector<8x160xf32>
    %26 = math.tanh %25 : vector<8x160xf32>
    %c1 = arith.constant 1 : index
    %c0_25 = arith.constant 0 : index
    %27 = vector.load %arg4[%c1, %c0_25] : memref<4x160xf32, #tpu.memory_space<vmem>>, vector<1x160xf32>
    %28 = vector.broadcast %27 : vector<1x160xf32> to vector<8x160xf32>
    %29 = arith.mulf %26, %28 : vector<8x160xf32>
    %c0_26 = arith.constant 0 : index
    %c0_27 = arith.constant 0 : index
    %30 = vector.load %arg2[%c0_26, %c0_27] : memref<160x160xf32, #tpu.memory_space<vmem>>, vector<160x160xf32>
    %cst_28 = arith.constant dense<0.000000e+00> : vector<8x160xf32>
    %31 = tpu.matmul %29, %30, %cst_28 {dimension_numbers = #tpu.dot_dimension_numbers<[1], [0], [0], [1], [0, 0, 1, 1], [], []>} : vector<8x160xf32>, vector<160x160xf32>, vector<8x160xf32> -> vector<8x160xf32>
    %c0_29 = arith.constant 0 : index
    %c0_30 = arith.constant 0 : index
    %32 = vector.load %arg3[%c0_29, %c0_30] : memref<1x160xf32, #tpu.memory_space<vmem>>, vector<1x160xf32>
    %33 = vector.broadcast %32 : vector<1x160xf32> to vector<8x160xf32>
    %34 = arith.addf %31, %33 : vector<8x160xf32>
    %c16 = arith.constant 16 : index
    %c0_31 = arith.constant 0 : index
    %35 = vector.load %arg8[%c16, %c0_31] : memref<64x160xf32, #tpu.memory_space<vmem>>, vector<8x160xf32>
    %36 = arith.addf %34, %35 : vector<8x160xf32>
    %37 = math.tanh %36 : vector<8x160xf32>
    %c2 = arith.constant 2 : index
    %c0_32 = arith.constant 0 : index
    %38 = vector.load %arg4[%c2, %c0_32] : memref<4x160xf32, #tpu.memory_space<vmem>>, vector<1x160xf32>
    %39 = vector.broadcast %38 : vector<1x160xf32> to vector<8x160xf32>
    %40 = arith.mulf %37, %39 : vector<8x160xf32>
    %c0_33 = arith.constant 0 : index
    %c0_34 = arith.constant 0 : index
    %41 = vector.load %arg2[%c0_33, %c0_34] : memref<160x160xf32, #tpu.memory_space<vmem>>, vector<160x160xf32>
    %cst_35 = arith.constant dense<0.000000e+00> : vector<8x160xf32>
    %42 = tpu.matmul %40, %41, %cst_35 {dimension_numbers = #tpu.dot_dimension_numbers<[1], [0], [0], [1], [0, 0, 1, 1], [], []>} : vector<8x160xf32>, vector<160x160xf32>, vector<8x160xf32> -> vector<8x160xf32>
    %c0_36 = arith.constant 0 : index
    %c0_37 = arith.constant 0 : index
    %43 = vector.load %arg3[%c0_36, %c0_37] : memref<1x160xf32, #tpu.memory_space<vmem>>, vector<1x160xf32>
    %44 = vector.broadcast %43 : vector<1x160xf32> to vector<8x160xf32>
    %45 = arith.addf %42, %44 : vector<8x160xf32>
    %c24 = arith.constant 24 : index
    %c0_38 = arith.constant 0 : index
    %46 = vector.load %arg8[%c24, %c0_38] : memref<64x160xf32, #tpu.memory_space<vmem>>, vector<8x160xf32>
    %47 = arith.addf %45, %46 : vector<8x160xf32>
    %48 = math.tanh %47 : vector<8x160xf32>
    %c3 = arith.constant 3 : index
    %c0_39 = arith.constant 0 : index
    %49 = vector.load %arg4[%c3, %c0_39] : memref<4x160xf32, #tpu.memory_space<vmem>>, vector<1x160xf32>
    %50 = vector.broadcast %49 : vector<1x160xf32> to vector<8x160xf32>
    %51 = arith.mulf %48, %50 : vector<8x160xf32>
    %c0_40 = arith.constant 0 : index
    %c0_41 = arith.constant 0 : index
    %52 = vector.load %arg2[%c0_40, %c0_41] : memref<160x160xf32, #tpu.memory_space<vmem>>, vector<160x160xf32>
    %cst_42 = arith.constant dense<0.000000e+00> : vector<8x160xf32>
    %53 = tpu.matmul %51, %52, %cst_42 {dimension_numbers = #tpu.dot_dimension_numbers<[1], [0], [0], [1], [0, 0, 1, 1], [], []>} : vector<8x160xf32>, vector<160x160xf32>, vector<8x160xf32> -> vector<8x160xf32>
    %c0_43 = arith.constant 0 : index
    %c0_44 = arith.constant 0 : index
    %54 = vector.load %arg3[%c0_43, %c0_44] : memref<1x160xf32, #tpu.memory_space<vmem>>, vector<1x160xf32>
    %55 = vector.broadcast %54 : vector<1x160xf32> to vector<8x160xf32>
    %56 = arith.addf %53, %55 : vector<8x160xf32>
    %c32 = arith.constant 32 : index
    %c0_45 = arith.constant 0 : index
    %57 = vector.load %arg8[%c32, %c0_45] : memref<64x160xf32, #tpu.memory_space<vmem>>, vector<8x160xf32>
    %58 = arith.addf %56, %57 : vector<8x160xf32>
    %59 = math.tanh %58 : vector<8x160xf32>
    %60 = vector.extract_strided_slice %59 {offsets = [0, 128], sizes = [8, 32], strides = [1, 1]} : vector<8x160xf32> to vector<8x32xf32>
    %c0_46 = arith.constant 0 : index
    %c0_47 = arith.constant 0 : index
    %61 = vector.load %arg5[%c0_46, %c0_47] : memref<8x32xf32, #tpu.memory_space<vmem>>, vector<1x32xf32>
    %62 = vector.broadcast %61 : vector<1x32xf32> to vector<8x32xf32>
    %63 = arith.mulf %60, %62 : vector<8x32xf32>
    %64 = arith.addf %7, %63 : vector<8x32xf32>
    %c0_48 = arith.constant 0 : index
    %c0_49 = arith.constant 0 : index
    %65 = vector.load %arg2[%c0_48, %c0_49] : memref<160x160xf32, #tpu.memory_space<vmem>>, vector<160x160xf32>
    %cst_50 = arith.constant dense<0.000000e+00> : vector<8x160xf32>
    %66 = tpu.matmul %59, %65, %cst_50 {dimension_numbers = #tpu.dot_dimension_numbers<[1], [0], [0], [1], [0, 0, 1, 1], [], []>} : vector<8x160xf32>, vector<160x160xf32>, vector<8x160xf32> -> vector<8x160xf32>
    %c0_51 = arith.constant 0 : index
    %c0_52 = arith.constant 0 : index
    %67 = vector.load %arg3[%c0_51, %c0_52] : memref<1x160xf32, #tpu.memory_space<vmem>>, vector<1x160xf32>
    %68 = vector.broadcast %67 : vector<1x160xf32> to vector<8x160xf32>
    %69 = arith.addf %66, %68 : vector<8x160xf32>
    %c40 = arith.constant 40 : index
    %c0_53 = arith.constant 0 : index
    %70 = vector.load %arg8[%c40, %c0_53] : memref<64x160xf32, #tpu.memory_space<vmem>>, vector<8x160xf32>
    %71 = arith.addf %69, %70 : vector<8x160xf32>
    %72 = math.tanh %71 : vector<8x160xf32>
    %73 = vector.extract_strided_slice %72 {offsets = [0, 128], sizes = [8, 32], strides = [1, 1]} : vector<8x160xf32> to vector<8x32xf32>
    %c1_54 = arith.constant 1 : index
    %c0_55 = arith.constant 0 : index
    %74 = vector.load %arg5[%c1_54, %c0_55] : memref<8x32xf32, #tpu.memory_space<vmem>>, vector<1x32xf32>
    %75 = vector.broadcast %74 : vector<1x32xf32> to vector<8x32xf32>
    %76 = arith.mulf %73, %75 : vector<8x32xf32>
    %77 = arith.addf %64, %76 : vector<8x32xf32>
    %c0_56 = arith.constant 0 : index
    %c0_57 = arith.constant 0 : index
    %78 = vector.load %arg2[%c0_56, %c0_57] : memref<160x160xf32, #tpu.memory_space<vmem>>, vector<160x160xf32>
    %cst_58 = arith.constant dense<0.000000e+00> : vector<8x160xf32>
    %79 = tpu.matmul %72, %78, %cst_58 {dimension_numbers = #tpu.dot_dimension_numbers<[1], [0], [0], [1], [0, 0, 1, 1], [], []>} : vector<8x160xf32>, vector<160x160xf32>, vector<8x160xf32> -> vector<8x160xf32>
    %c0_59 = arith.constant 0 : index
    %c0_60 = arith.constant 0 : index
    %80 = vector.load %arg3[%c0_59, %c0_60] : memref<1x160xf32, #tpu.memory_space<vmem>>, vector<1x160xf32>
    %81 = vector.broadcast %80 : vector<1x160xf32> to vector<8x160xf32>
    %82 = arith.addf %79, %81 : vector<8x160xf32>
    %c48 = arith.constant 48 : index
    %c0_61 = arith.constant 0 : index
    %83 = vector.load %arg8[%c48, %c0_61] : memref<64x160xf32, #tpu.memory_space<vmem>>, vector<8x160xf32>
    %84 = arith.addf %82, %83 : vector<8x160xf32>
    %85 = math.tanh %84 : vector<8x160xf32>
    %86 = vector.extract_strided_slice %85 {offsets = [0, 128], sizes = [8, 32], strides = [1, 1]} : vector<8x160xf32> to vector<8x32xf32>
    %c2_62 = arith.constant 2 : index
    %c0_63 = arith.constant 0 : index
    %87 = vector.load %arg5[%c2_62, %c0_63] : memref<8x32xf32, #tpu.memory_space<vmem>>, vector<1x32xf32>
    %88 = vector.broadcast %87 : vector<1x32xf32> to vector<8x32xf32>
    %89 = arith.mulf %86, %88 : vector<8x32xf32>
    %90 = arith.addf %77, %89 : vector<8x32xf32>
    %c0_64 = arith.constant 0 : index
    %c0_65 = arith.constant 0 : index
    %91 = vector.load %arg2[%c0_64, %c0_65] : memref<160x160xf32, #tpu.memory_space<vmem>>, vector<160x160xf32>
    %cst_66 = arith.constant dense<0.000000e+00> : vector<8x160xf32>
    %92 = tpu.matmul %85, %91, %cst_66 {dimension_numbers = #tpu.dot_dimension_numbers<[1], [0], [0], [1], [0, 0, 1, 1], [], []>} : vector<8x160xf32>, vector<160x160xf32>, vector<8x160xf32> -> vector<8x160xf32>
    %c0_67 = arith.constant 0 : index
    %c0_68 = arith.constant 0 : index
    %93 = vector.load %arg3[%c0_67, %c0_68] : memref<1x160xf32, #tpu.memory_space<vmem>>, vector<1x160xf32>
    %94 = vector.broadcast %93 : vector<1x160xf32> to vector<8x160xf32>
    %95 = arith.addf %92, %94 : vector<8x160xf32>
    %c56 = arith.constant 56 : index
    %c0_69 = arith.constant 0 : index
    %96 = vector.load %arg8[%c56, %c0_69] : memref<64x160xf32, #tpu.memory_space<vmem>>, vector<8x160xf32>
    %97 = arith.addf %95, %96 : vector<8x160xf32>
    %98 = math.tanh %97 : vector<8x160xf32>
    %99 = vector.extract_strided_slice %98 {offsets = [0, 128], sizes = [8, 32], strides = [1, 1]} : vector<8x160xf32> to vector<8x32xf32>
    %c3_70 = arith.constant 3 : index
    %c0_71 = arith.constant 0 : index
    %100 = vector.load %arg5[%c3_70, %c0_71] : memref<8x32xf32, #tpu.memory_space<vmem>>, vector<1x32xf32>
    %101 = vector.broadcast %100 : vector<1x32xf32> to vector<8x32xf32>
    %102 = arith.mulf %99, %101 : vector<8x32xf32>
    %103 = arith.addf %90, %102 : vector<8x32xf32>
    %c0_72 = arith.constant 0 : index
    %c0_73 = arith.constant 0 : index
    %104 = vector.load %arg2[%c0_72, %c0_73] : memref<160x160xf32, #tpu.memory_space<vmem>>, vector<160x160xf32>
    %cst_74 = arith.constant dense<0.000000e+00> : vector<8x160xf32>
    %105 = tpu.matmul %98, %104, %cst_74 {dimension_numbers = #tpu.dot_dimension_numbers<[1], [0], [0], [1], [0, 0, 1, 1], [], []>} : vector<8x160xf32>, vector<160x160xf32>, vector<8x160xf32> -> vector<8x160xf32>
    %c0_75 = arith.constant 0 : index
    %c0_76 = arith.constant 0 : index
    %106 = vector.load %arg3[%c0_75, %c0_76] : memref<1x160xf32, #tpu.memory_space<vmem>>, vector<1x160xf32>
    %107 = vector.broadcast %106 : vector<1x160xf32> to vector<8x160xf32>
    %108 = arith.addf %105, %107 : vector<8x160xf32>
    %109 = math.tanh %108 : vector<8x160xf32>
    %110 = vector.extract_strided_slice %109 {offsets = [0, 128], sizes = [8, 32], strides = [1, 1]} : vector<8x160xf32> to vector<8x32xf32>
    %c4 = arith.constant 4 : index
    %c0_77 = arith.constant 0 : index
    %111 = vector.load %arg5[%c4, %c0_77] : memref<8x32xf32, #tpu.memory_space<vmem>>, vector<1x32xf32>
    %112 = vector.broadcast %111 : vector<1x32xf32> to vector<8x32xf32>
    %113 = arith.mulf %110, %112 : vector<8x32xf32>
    %114 = arith.addf %103, %113 : vector<8x32xf32>
    %c0_78 = arith.constant 0 : index
    %c0_79 = arith.constant 0 : index
    %115 = vector.load %arg2[%c0_78, %c0_79] : memref<160x160xf32, #tpu.memory_space<vmem>>, vector<160x160xf32>
    %cst_80 = arith.constant dense<0.000000e+00> : vector<8x160xf32>
    %116 = tpu.matmul %109, %115, %cst_80 {dimension_numbers = #tpu.dot_dimension_numbers<[1], [0], [0], [1], [0, 0, 1, 1], [], []>} : vector<8x160xf32>, vector<160x160xf32>, vector<8x160xf32> -> vector<8x160xf32>
    %c0_81 = arith.constant 0 : index
    %c0_82 = arith.constant 0 : index
    %117 = vector.load %arg3[%c0_81, %c0_82] : memref<1x160xf32, #tpu.memory_space<vmem>>, vector<1x160xf32>
    %118 = vector.broadcast %117 : vector<1x160xf32> to vector<8x160xf32>
    %119 = arith.addf %116, %118 : vector<8x160xf32>
    %120 = math.tanh %119 : vector<8x160xf32>
    %121 = vector.extract_strided_slice %120 {offsets = [0, 128], sizes = [8, 32], strides = [1, 1]} : vector<8x160xf32> to vector<8x32xf32>
    %c5 = arith.constant 5 : index
    %c0_83 = arith.constant 0 : index
    %122 = vector.load %arg5[%c5, %c0_83] : memref<8x32xf32, #tpu.memory_space<vmem>>, vector<1x32xf32>
    %123 = vector.broadcast %122 : vector<1x32xf32> to vector<8x32xf32>
    %124 = arith.mulf %121, %123 : vector<8x32xf32>
    %125 = arith.addf %114, %124 : vector<8x32xf32>
    %c0_84 = arith.constant 0 : index
    %c0_85 = arith.constant 0 : index
    %126 = vector.load %arg2[%c0_84, %c0_85] : memref<160x160xf32, #tpu.memory_space<vmem>>, vector<160x160xf32>
    %cst_86 = arith.constant dense<0.000000e+00> : vector<8x160xf32>
    %127 = tpu.matmul %120, %126, %cst_86 {dimension_numbers = #tpu.dot_dimension_numbers<[1], [0], [0], [1], [0, 0, 1, 1], [], []>} : vector<8x160xf32>, vector<160x160xf32>, vector<8x160xf32> -> vector<8x160xf32>
    %c0_87 = arith.constant 0 : index
    %c0_88 = arith.constant 0 : index
    %128 = vector.load %arg3[%c0_87, %c0_88] : memref<1x160xf32, #tpu.memory_space<vmem>>, vector<1x160xf32>
    %129 = vector.broadcast %128 : vector<1x160xf32> to vector<8x160xf32>
    %130 = arith.addf %127, %129 : vector<8x160xf32>
    %131 = math.tanh %130 : vector<8x160xf32>
    %132 = vector.extract_strided_slice %131 {offsets = [0, 128], sizes = [8, 32], strides = [1, 1]} : vector<8x160xf32> to vector<8x32xf32>
    %c6 = arith.constant 6 : index
    %c0_89 = arith.constant 0 : index
    %133 = vector.load %arg5[%c6, %c0_89] : memref<8x32xf32, #tpu.memory_space<vmem>>, vector<1x32xf32>
    %134 = vector.broadcast %133 : vector<1x32xf32> to vector<8x32xf32>
    %135 = arith.mulf %132, %134 : vector<8x32xf32>
    %136 = arith.addf %125, %135 : vector<8x32xf32>
    %c0_90 = arith.constant 0 : index
    %c0_91 = arith.constant 0 : index
    %137 = vector.load %arg2[%c0_90, %c0_91] : memref<160x160xf32, #tpu.memory_space<vmem>>, vector<160x160xf32>
    %cst_92 = arith.constant dense<0.000000e+00> : vector<8x160xf32>
    %138 = tpu.matmul %131, %137, %cst_92 {dimension_numbers = #tpu.dot_dimension_numbers<[1], [0], [0], [1], [0, 0, 1, 1], [], []>} : vector<8x160xf32>, vector<160x160xf32>, vector<8x160xf32> -> vector<8x160xf32>
    %c0_93 = arith.constant 0 : index
    %c0_94 = arith.constant 0 : index
    %139 = vector.load %arg3[%c0_93, %c0_94] : memref<1x160xf32, #tpu.memory_space<vmem>>, vector<1x160xf32>
    %140 = vector.broadcast %139 : vector<1x160xf32> to vector<8x160xf32>
    %141 = arith.addf %138, %140 : vector<8x160xf32>
    %142 = math.tanh %141 : vector<8x160xf32>
    %143 = vector.extract_strided_slice %142 {offsets = [0, 128], sizes = [8, 32], strides = [1, 1]} : vector<8x160xf32> to vector<8x32xf32>
    %c7 = arith.constant 7 : index
    %c0_95 = arith.constant 0 : index
    %144 = vector.load %arg5[%c7, %c0_95] : memref<8x32xf32, #tpu.memory_space<vmem>>, vector<1x32xf32>
    %145 = vector.broadcast %144 : vector<1x32xf32> to vector<8x32xf32>
    %146 = arith.mulf %143, %145 : vector<8x32xf32>
    %147 = arith.addf %136, %146 : vector<8x32xf32>
    %cst_96 = arith.constant dense<0.000000e+00> : vector<8xf32>
    %148 = vector.multi_reduction <add>, %147, %cst_96 [1] : vector<8x32xf32> to vector<8xf32>
    %149 = vector.shape_cast %148 : vector<8xf32> to vector<8x1xf32>
    %c0_97 = arith.constant 0 : index
    %150 = memref.load %arg6[%c0_97] : memref<1xf32, #tpu.memory_space<smem>>
    %151 = vector.broadcast %150 : f32 to vector<8x1xf32>
    %152 = arith.addf %149, %151 : vector<8x1xf32>
    %c0_98 = arith.constant 0 : index
    %c0_99 = arith.constant 0 : index
    %153 = vector.load %arg7[%c0_98, %c0_99] : memref<8x1xf32, #tpu.memory_space<vmem>>, vector<8x1xf32>
    tpu.vector_store %arg7[%c0_98, %c0_99], %152 {strides = array<i32>} : memref<8x1xf32, #tpu.memory_space<vmem>>, vector<8x1xf32>,
    return
  }
}

</mosaic_0001>

<bundles_post_ra>
// kernel: tpu_custom_call.1
= control target key start
LH: loop header
LB: loop body
LE: loop exit
PB: predicated region body
PF: predicated region fallthrough
CT: control target
= control target key end

     0   :  { %13 = vsyncpa [#allocation5], 0  ;;  %s1939_s24 = smov [#allocation4]   ;;  %s2442_s0 = inlined_call_operand.vmem [shape: f32[64,4], index: 0, kind: input, shape index: {}]   ;;  %s2443_s1 = inlined_call_operand.vmem [shape: f32[4,32], index: 1, kind: input, shape index: {}]   ;;  %s2444_s2 = inlined_call_operand.hbm [shape: f32[160,160], index: 2, kind: input, shape index: {}]   ;;  %s2445_s3 = inlined_call_operand.vmem [shape: f32[1,160], index: 3, kind: input, shape index: {}]   ;;  %s2446_s4 = inlined_call_operand.vmem [shape: f32[4,160], index: 4, kind: input, shape index: {}]   ;;  %s2447_s5 = inlined_call_operand.vmem [shape: f32[8,32], index: 5, kind: input, shape index: {}]   ;;  %s2448_s6 = inlined_call_operand.<no memory space> [shape: f32[1], index: 6, kind: input, shape index: {}]   ;;  %s2449_s7 = inlined_call_operand.vmem [shape: f32[8,1], index: 7, kind: output, shape index: {}]  }
   0x1   :  { %s23_s25 = sshll.u32 %s1939_s24, 4  ;;  %s1915_s28 = scalar_lea.hbm %s2444_s2, 5120  ;;  %s24_s25 = int_to_ptr.vmem [resolvable:$true] %s23_s25 }
   0x2   :  { %p1916_p0 = scmp.ne.s32.totalorder %s2444_s2, %s1915_s28  ;;  %p1919_p1 = scmp.lt.u32.totalorder %s1915_s28, %s2444_s2 }
   0x4   :  { %p1921_p2 = pnand %p1919_p1, %p1916_p0 }
   0x6   :  { %1924 = shalt.err (!%p1921_p2)
}
   0x7   :  { %s1925_s10 = scalar_lea.vmem %s24_s25, 5120  ;;  %p1930_p4 = scmp.lt.s32.totalorder %s24_s25, %s24_s25 }
   0x8   :  { %p1926_p3 = scmp.ne.s32.totalorder %s24_s25, %s1925_s10  ;;  %p1931_p5 = scmp.lt.s32.totalorder %s1925_s10, %s1925_s10 }
   0xa   :  { %p1932_p6 = por %p1931_p5, %p1930_p4 }
   0xc   :  { %p1933_p7 = pnand %p1932_p6, %p1926_p3 }
   0xe   :  { %1936 = shalt.err (!%p1933_p7)
}
   0xf   :  { %s1940_s11 = smov 256   ;;  %s1941_s12 = smov 16  }
  0x10   :  { %29 = dma.hbm_to_vmem [thread:$0]  %s2444_s2, 5120, %s24_s25, [#allocation5], %s1940_s11, %s1940_s11, %s1941_s12  }
  0x11   :  { %1937 = dma.done.wait [#allocation5], 5120  }
  0x12   :  { %1938 = vsyncadd [#allocation5], 4294962176  ;;  %vm42_vm0 = vcmask 261120   ;;  %v1942_v0 = vmov 0.0   ;;  %v210_v1 = vld [vmem:[#allocation4 + $0x8] sm:$0xff]  ;;  %v212_v2 = vld [vmem:[#allocation4 + $0x18] sm:$0xff] }
  0x13   :  { %328 = vmatprep.mubr.f32.mxu1 %v1942_v0  ;;  %41 = vst [vmem:[#allocation2] sm:$0xff] %v1942_v0  ;;  %44 = vst [vmem:[#allocation2 + $0x10] sm:$0xff] %v1942_v0  ;;  %v209_v3 = vld [vmem:[#allocation4] sm:$0xff]  ;;  %v2020_v4 = vpack.c.bf16 %v212_v2, %v210_v1  ;;  %v211_v5 = vld [vmem:[#allocation4 + $0x10] sm:$0xff]  ;;  %vm92_vm1 = vcmask 1043456   ;;  %vm67_vm2 = vcmask 31744  }
  0x14   :  { %46 = vst [vmem:[#allocation2 + $0x20] sm:$0xff] %v1942_v0  ;;  %48 = vst [vmem:[#allocation2 + $0x30] sm:$0xff] %v1942_v0  ;;  %v214_v6 = vld [vmem:[#allocation4 + $0x28] sm:$0xff]  ;;  %v216_v7 = vld [vmem:[#allocation4 + $0x38] sm:$0xff]  ;;  %v2022_v8 = vpack.c.bf16 %v211_v5, %v209_v3  ;;  %vm1324_vm3 = vcmask 7168  }
  0x15   :  { %50 = vst [vmem:[#allocation2 + $0x40] sm:$0xff] %v1942_v0  ;;  %52 = vst [vmem:[#allocation2 + $0x50] sm:$0xff] %v1942_v0  ;;  %v2024_v9 = vpack.c.bf16 %v216_v7, %v214_v6  ;;  %v213_v10 = vld [vmem:[#allocation4 + $0x20] sm:$0xff]  ;;  %v215_v11 = vld [vmem:[#allocation4 + $0x30] sm:$0xff]  ;;  %1386 = vmatprep.subr.bf16.mxu1 %v2020_v4 }
  0x16   :  { %54 = vst [vmem:[#allocation2 + $0x60] sm:$0xff] %v1942_v0  ;;  %56 = vst [vmem:[#allocation2 + $0x70] sm:$0xff] %v1942_v0  ;;  %v218_v12 = vld [vmem:[#allocation4 + $0x48] sm:$0xff]  ;;  %v220_v13 = vld [vmem:[#allocation4 + $0x58] sm:$0xff]  ;;  %1388 = vmatpush1.bf16.msra.mxu1 %v2022_v8  ;;  %v2028_v14 = vpack.c.bf16 %v215_v11, %v213_v10  ;;  %v251_v11 = vlaneseq }
  0x17   :  { %43 = vst.msk [vmem:[#allocation2 + $0x8] sm:$0xff] %vm42_vm0, %v1942_v0  ;;  %45 = vst.msk [vmem:[#allocation2 + $0x18] sm:$0xff] %vm42_vm0, %v1942_v0  ;;  %1390 = vmatprep.subr.bf16.mxu1 %v2024_v9  ;;  %v2031_v15 = vpack.c.bf16 %v220_v13, %v218_v12  ;;  %v217_v16 = vld [vmem:[#allocation4 + $0x40] sm:$0xff]  ;;  %v219_v17 = vld [vmem:[#allocation4 + $0x50] sm:$0xff] }
  0x18   :  { %47 = vst.msk [vmem:[#allocation2 + $0x28] sm:$0xff] %vm42_vm0, %v1942_v0  ;;  %49 = vst.msk [vmem:[#allocation2 + $0x38] sm:$0xff] %vm42_vm0, %v1942_v0  ;;  %v222_v18 = vld [vmem:[#allocation4 + $0x68] sm:$0xff]  ;;  %v224_v19 = vld [vmem:[#allocation4 + $0x78] sm:$0xff]  ;;  %v2034_v20 = vpack.c.bf16 %v219_v17, %v217_v16  ;;  %v252_v12 = vshrl.u32 %v251_v11, 7 }
  0x19   :  { %51 = vst.msk [vmem:[#allocation2 + $0x48] sm:$0xff] %vm42_vm0, %v1942_v0  ;;  %53 = vst.msk [vmem:[#allocation2 + $0x58] sm:$0xff] %vm42_vm0, %v1942_v0  ;;  %v2037_v21 = vpack.c.bf16 %v224_v19, %v222_v18  ;;  %v221_v22 = vld [vmem:[#allocation4 + $0x60] sm:$0xff]  ;;  %v223_v23 = vld [vmem:[#allocation4 + $0x70] sm:$0xff] }
  0x1a   :  { %55 = vst.msk [vmem:[#allocation2 + $0x68] sm:$0xff] %vm42_vm0, %v1942_v0  ;;  %57 = vst.msk [vmem:[#allocation2 + $0x78] sm:$0xff] %vm42_vm0, %v1942_v0  ;;  %1392 = vmatpush1.bf16.msra.mxu1 %v2028_v14  ;;  %v226_v24 = vld [vmem:[#allocation4 + $0x88] sm:$0xff]  ;;  %v228_v25 = vld [vmem:[#allocation4 + $0x98] sm:$0xff]  ;;  %v2046_v28 = vpack.c.bf16 %v223_v23, %v221_v22  ;;  %v2160_v13 = vsub.s32 0, %v252_v12  ;;  %v2165_v17 = vsub.s32 1, %v252_v12 }
  0x1b   :  { %1394 = vmatprep.subr.bf16.mxu1 %v2031_v15  ;;  %v66_v26 = vld [vmem:[%s2443_s1] sm:$0xf]  ;;  %v59_v29 = vld [vmem:[%s2442_s0 + $0x8] sm:$0xff]  ;;  %v2052_v30 = vpack.c.bf16 %v228_v25, %v226_v24  ;;  %v227_v32 = vld [vmem:[#allocation4 + $0x90] sm:$0xff] }
  0x1c   :  { %1371 = vmatprep.subr.msk.mxu0 %vm92_vm1, %v66_v26  ;;  %v58_v27 = vld [vmem:[%s2442_s0] sm:$0xff]  ;;  %v230_v33 = vld [vmem:[#allocation4 + $0xa8] sm:$0xff]  ;;  %v232_v34 = vld [vmem:[#allocation4 + $0xb8] sm:$0xff] }
  0x1d   :  { %1372 = vmatpush3.msk.msra.mxu0 %vm92_vm1, %v66_v26  ;;  %v225_v31 = vld [vmem:[#allocation4 + $0x80] sm:$0xff]  ;;  %1373 = vmatprep.mubr.msk.f32.mxu0 %vm67_vm2, %v58_v27  ;;  %v2063_v36 = vpack.c.bf16 %v232_v34, %v230_v33  ;;  %v231_v38 = vld [vmem:[#allocation4 + $0xb0] sm:$0xff]  ;;  %v234_v39 = vld [vmem:[#allocation4 + $0xc8] sm:$0xff] }
  0x1e   :  { %1396 = vmatpush1.bf16.msra.mxu1 %v2034_v20  ;;  %1374 = vmatmul.mubr.msk.f32.vlgmr.msra.gmra.mrb[0].mxu0 %vm67_vm2, %v59_v29  ;;  %v2059_v35 = vpack.c.bf16 %v227_v32, %v225_v31  ;;  %v229_v37 = vld [vmem:[#allocation4 + $0xa0] sm:$0xff]  ;;  %v236_v40 = vld [vmem:[#allocation4 + $0xd8] sm:$0xff]  ;;  %v235_v44 = vld [vmem:[#allocation4 + $0xd0] sm:$0xff] }
  0x1f   :  { %1398 = vmatprep.subr.bf16.mxu1 %v2037_v21  ;;  %1426 = vmatprep.subr.bf16.mxu0 %v2020_v4  ;;  %v2067_v41 = vpack.c.bf16 %v231_v38, %v229_v37  ;;  %v2071_v42 = vpack.c.bf16 %v236_v40, %v234_v39  ;;  %v233_v43 = vld [vmem:[#allocation4 + $0xc0] sm:$0xff]  ;;  %v238_v45 = vld [vmem:[#allocation4 + $0xe8] sm:$0xff]  ;;  %v240_v46 = vld [vmem:[#allocation4 + $0xf8] sm:$0xff] }
  0x20   :  { %1428 = vmatpush1.bf16.msra.mxu0 %v2022_v8  ;;  %v2075_v47 = vpack.c.bf16 %v235_v44, %v233_v43  ;;  %v2079_v48 = vpack.c.bf16 %v240_v46, %v238_v45  ;;  %v237_v49 = vld [vmem:[#allocation4 + $0xe0] sm:$0xff]  ;;  %v239_v50 = vld [vmem:[#allocation4 + $0xf0] sm:$0xff]  ;;  %v242_v51 = vld [vmem:[#allocation4 + $0x108] sm:$0xff] }
  0x21   :  { %1430 = vmatprep.subr.bf16.mxu0 %v2024_v9  ;;  %v244_v52 = vld [vmem:[#allocation4 + $0x118] sm:$0xff]  ;;  %v2083_v53 = vpack.c.bf16 %v239_v50, %v237_v49  ;;  %v241_v55 = vld [vmem:[#allocation4 + $0x100] sm:$0xff]  ;;  %v243_v56 = vld [vmem:[#allocation4 + $0x110] sm:$0xff] }
  0x22   :  { %1400 = vmatpush1.bf16.msra.mxu1 %v2046_v28  ;;  %v2087_v54 = vpack.c.bf16 %v244_v52, %v242_v51  ;;  %v246_v57 = vld [vmem:[#allocation4 + $0x128] sm:$0xff]  ;;  %v248_v58 = vld [vmem:[#allocation4 + $0x138] sm:$0xff]  ;;  %v2091_v59 = vpack.c.bf16 %v243_v56, %v241_v55  ;;  %v245_v61 = vld [vmem:[#allocation4 + $0x120] sm:$0xff] }
  0x23   :  { %1402 = vmatprep.subr.bf16.mxu1 %v2052_v30  ;;  %v2095_v60 = vpack.c.bf16 %v248_v58, %v246_v57  ;;  %v247_v62 = vld [vmem:[#allocation4 + $0x130] sm:$0xff]  ;;  %v61_v1 = vld [vmem:[%s2442_s0 + $0x18] sm:$0xff]  ;;  %v62_v2 = vld [vmem:[%s2442_s0 + $0x20] sm:$0xff] }
  0x24   :  { %1432 = vmatpush1.bf16.msra.mxu0 %v2028_v14  ;;  %v2099_v63 = vpack.c.bf16 %v247_v62, %v245_v61  ;;  %v63_v3 = vld [vmem:[%s2442_s0 + $0x28] sm:$0xff]  ;;  %v64_v5 = vld [vmem:[%s2442_s0 + $0x30] sm:$0xff]  ;;  %v65_v6 = vld [vmem:[%s2442_s0 + $0x38] sm:$0xff] }
  0x25   :  { %1434 = vmatprep.subr.bf16.mxu0 %v2031_v15  ;;  %v249_v16 = vld [vmem:[%s2445_s3] sm:$0x3]  ;;  %v336_v26 = vld [vmem:[#allocation2 + $0x8] sm:$0xff]  ;;  %v430_v56 = vld [vmem:[#allocation2 + $0x18] sm:$0xff] }
  0x26   :  { %1404 = vmatpush1.bf16.msra.mxu1 %v2059_v35  ;;  %v2168_v18 = vrot.slane %v249_v16, %v2160_v13  ;;  %v2171_v19 = vrot.slane %v249_v16, %v2165_v17  ;;  %v341_v32 = vld [vmem:[%s2446_s4] ss:$4 sm:$0x3]  ;;  %v525_v16 = vld [vmem:[#allocation2 + $0x28] sm:$0xff] }
  0x27   :  { %1406 = vmatprep.subr.bf16.mxu1 %v2063_v36  ;;  %v350_v33 = vrot.slane %v341_v32, %v2165_v17  ;;  %v346_v34 = vrot.slane %v341_v32, %v2160_v13 }
  0x28   :  { %1436 = vmatpush1.bf16.msra.mxu0 %v2034_v20 }
  0x29   :  { %1438 = vmatprep.subr.bf16.mxu0 %v2037_v21 }
  0x2a   :  { %1408 = vmatpush1.bf16.msra.mxu1 %v2067_v41 }
  0x2b   :  { %1410 = vmatprep.subr.bf16.mxu1 %v2071_v42 }
  0x2c   :  { %1440 = vmatpush1.bf16.msra.mxu0 %v2046_v28 }
  0x2d   :  { %1442 = vmatprep.subr.bf16.mxu0 %v2052_v30 }
  0x2e   :  { %1412 = vmatpush1.bf16.msra.mxu1 %v2075_v47 }
  0x2f   :  { %1414 = vmatprep.subr.bf16.mxu1 %v2079_v48 }
  0x30   :  { %1444 = vmatpush1.bf16.msra.mxu0 %v2059_v35 }
  0x31   :  { %1446 = vmatprep.subr.bf16.mxu0 %v2063_v36 }
  0x32   :  { %1416 = vmatpush1.bf16.msra.mxu1 %v2083_v53 }
  0x33   :  { %1418 = vmatprep.subr.bf16.mxu1 %v2087_v54 }
  0x34   :  { %1448 = vmatpush1.bf16.msra.mxu0 %v2067_v41 }
  0x35   :  { %1450 = vmatprep.subr.bf16.mxu0 %v2071_v42 }
  0x36   :  { %1420 = vmatpush1.bf16.msra.mxu1 %v2091_v59 }
  0x37   :  { %1422 = vmatprep.subr.bf16.mxu1 %v2095_v60 }
  0x38   :  { %1452 = vmatpush1.bf16.msra.mxu0 %v2075_v47 }
  0x39   :  { %1454 = vmatprep.subr.bf16.mxu0 %v2079_v48 }
  0x3a   :  { %1424 = vmatpush1.bf16.msra.mxu1 %v2099_v63 }
  0x3b   :  { %1466 = vmatprep.subr.bf16.mxu1 %v2020_v4 }
  0x3c   :  { %1456 = vmatpush1.bf16.msra.mxu0 %v2083_v53 }
  0x3d   :  { %329 = vmatmul.mubr.f32.vlgmr.msra.gmra.mrb[0].mxu1 %v1942_v0  ;;  %1458 = vmatprep.subr.bf16.mxu0 %v2087_v54  ;;  %v60_v0 = vld [vmem:[%s2442_s0 + $0x10] sm:$0xff] }
  0x3e   :  { %1468 = vmatpush1.bf16.msra.mxu1 %v2022_v8  ;;  %1376 = vmatprep.mubr.msk.f32.mxu0 %vm67_vm2, %v60_v0  ;;  %v1341_v0 = vld [vmem:[%s2446_s4 + $0x1] ss:$4 sm:$0x3] }
  0x3f   :  { %1470 = vmatprep.subr.bf16.mxu1 %v2024_v9  ;;  %1377 = vmatmul.mubr.msk.f32.gmra.mrb[2].mxu0 %vm67_vm2, %v61_v1  ;;  %v445_v1 = vrot.slane %v1341_v0, %v2165_v17 }
  0x40   :  { %1460 = vmatpush1.bf16.msra.mxu0 %v2091_v59  ;;  %1379 = vmatprep.mubr.msk.f32.mxu0 %vm67_vm2, %v62_v2  ;;  %v441_v2 = vrot.slane %v1341_v0, %v2160_v13 }
  0x41   :  { %1462 = vmatprep.subr.bf16.mxu0 %v2095_v60 }
  0x42   :  { %1472 = vmatpush1.bf16.msra.mxu1 %v2028_v14 }
  0x43   :  { %1474 = vmatprep.subr.bf16.mxu1 %v2031_v15  ;;  %1380 = vmatmul.mubr.msk.f32.gmra.mrb[4].mxu0 %vm67_vm2, %v63_v3 }
  0x44   :  { %1464 = vmatpush1.bf16.msra.mxu0 %v2099_v63  ;;  %1382 = vmatprep.mubr.msk.f32.mxu0 %vm67_vm2, %v64_v5 }
  0x45   :  { %1506 = vmatprep.subr.bf16.mxu0 %v2020_v4 }
  0x46   :  { %1476 = vmatpush1.bf16.msra.mxu1 %v2034_v20 }
  0x47   :  { %1478 = vmatprep.subr.bf16.mxu1 %v2037_v21  ;;  %1383 = vmatmul.mubr.msk.f32.gmra.mrb[6].mxu0 %vm67_vm2, %v65_v6 }
  0x4a   :  { %1480 = vmatpush1.bf16.msra.mxu1 %v2046_v28 }
  0x4b   :  { %1482 = vmatprep.subr.bf16.mxu1 %v2052_v30 }
  0x4e   :  { %1484 = vmatpush1.bf16.msra.mxu1 %v2059_v35 }
  0x4f   :  { %1486 = vmatprep.subr.bf16.mxu1 %v2063_v36 }
  0x52   :  { %1488 = vmatpush1.bf16.msra.mxu1 %v2067_v41 }
  0x53   :  { %1490 = vmatprep.subr.bf16.mxu1 %v2071_v42 }
  0x56   :  { %1492 = vmatpush1.bf16.msra.mxu1 %v2075_v47 }
  0x57   :  { %1494 = vmatprep.subr.bf16.mxu1 %v2079_v48 }
  0x5a   :  { %1496 = vmatpush1.bf16.msra.mxu1 %v2083_v53 }
  0x5b   :  { %1498 = vmatprep.subr.bf16.mxu1 %v2087_v54 }
  0x5e   :  { %1500 = vmatpush1.bf16.msra.mxu1 %v2091_v59 }
  0x5f   :  { %1502 = vmatprep.subr.bf16.mxu1 %v2095_v60 }
  0x62   :  { %1504 = vmatpush1.bf16.msra.mxu1 %v2099_v63 }
  0x63   :  { %1546 = vmatprep.subr.bf16.mxu1 %v2020_v4 }
  0xf1   :  { %v1375_v7 = vpop.f32.mrb[0].mxu0 }
  0xf2   :  { %202 = vst.msk [vmem:[#allocation2 + $0x10] sm:$0xff] %vm42_vm0, %v1375_v7  ;;  %v162_v10 = vpop.f32.mrb[1].mxu0 }
  0xf3   :  { %201 = vst.msk [vmem:[#allocation2] sm:$0xff] %vm42_vm0, %v162_v10 }
  0xf9   :  { %v429_v57 = vld [vmem:[#allocation2 + $0x10] sm:$0xff] }
  0xfa   :  { %v335_v23 = vld [vmem:[#allocation2] sm:$0xff] }
 0x110   :  { %v330_v22 = vpop.f32.mrb[0].mxu1 }
 0x111   :  { %v331_v24 = vadd.f32 %v330_v22, %v2168_v18  ;;  %v332_v25 = vpop.f32.mrb[1].mxu1 }
 0x112   :  { %v333_v27 = vadd.f32 %v332_v25, %v2171_v19  ;;  %v1378_v43 = vpop.f32.mrb[2].mxu0 }
 0x113   :  { %v337_v29 = vadd.f32 %v335_v23, %v331_v24  ;;  %204 = vst.msk [vmem:[#allocation2 + $0x30] sm:$0xff] %vm42_vm0, %v1378_v43  ;;  %v172_v44 = vpop.f32.mrb[3].mxu0 }
 0x114   :  { %v338_v31 = vadd.f32 %v336_v26, %v333_v27  ;;  %203 = vst.msk [vmem:[#allocation2 + $0x20] sm:$0xff] %vm42_vm0, %v172_v44  ;;  %v1343_v26 = vld [vmem:[%s2446_s4 + $0x2] ss:$4 sm:$0x3] }
 0x115   :  { %1869 = vtanh.f32 %v337_v29  ;;  %v540_v27 = vrot.slane %v1343_v26, %v2165_v17  ;;  %v536_v29 = vrot.slane %v1343_v26, %v2160_v13 }
 0x116   :  { %1871 = vtanh.f32 %v338_v31  ;;  %v1381_v45 = vpop.f32.mrb[4].mxu0 }
 0x117   :  { %206 = vst.msk [vmem:[#allocation2 + $0x50] sm:$0xff] %vm42_vm0, %v1381_v45  ;;  %v182_v46 = vpop.f32.mrb[5].mxu0 }
 0x118   :  { %205 = vst.msk [vmem:[#allocation2 + $0x40] sm:$0xff] %vm42_vm0, %v182_v46 }
 0x11a   :  { %v1384_v49 = vpop.f32.mrb[6].mxu0  ;;  %v619_v43 = vld [vmem:[#allocation2 + $0x30] sm:$0xff] }
 0x11b   :  { %208 = vst.msk [vmem:[#allocation2 + $0x70] sm:$0xff] %vm42_vm0, %v1384_v49  ;;  %v192_v50 = vpop.f32.mrb[7].mxu0  ;;  %v524_v22 = vld [vmem:[#allocation2 + $0x20] sm:$0xff] }
 0x11c   :  { %207 = vst.msk [vmem:[#allocation2 + $0x60] sm:$0xff] %vm42_vm0, %v192_v50  ;;  %v1345_v49 = vld [vmem:[%s2446_s4 + $0x3] ss:$4 sm:$0x3] }
 0x11d   :  { %v635_v50 = vrot.slane %v1345_v49, %v2165_v17 }
 0x11f   :  { %v1870_v37 = vpop.eup %1869 }
 0x120   :  { %v1872_v38 = vpop.eup %1871  ;;  %v353_v40 = vmul.f32 %v1870_v37, %v346_v34 }
 0x121   :  { %v354_v39 = vmul.f32 %v1872_v38, %v350_v33 }
 0x123   :  { %1340 = vmatprep.mubr.msk.f32.mxu0 %vm42_vm0, %v354_v39 }
 0x124   :  { %423 = vmatmul.mubr.f32.vlgmr.msra.gmra.mrb[8].mxu0 %v353_v40  ;;  %v620_v40 = vld [vmem:[#allocation2 + $0x38] sm:$0xff] }
 0x125   :  { %1508 = vmatpush1.bf16.msra.mxu0 %v2022_v8 }
 0x126   :  { %1510 = vmatprep.subr.bf16.mxu0 %v2024_v9 }
 0x129   :  { %1512 = vmatpush1.bf16.msra.mxu0 %v2028_v14 }
 0x12a   :  { %1514 = vmatprep.subr.bf16.mxu0 %v2031_v15 }
 0x12d   :  { %1516 = vmatpush1.bf16.msra.mxu0 %v2034_v20 }
 0x12e   :  { %1518 = vmatprep.subr.bf16.mxu0 %v2037_v21 }
 0x131   :  { %1520 = vmatpush1.bf16.msra.mxu0 %v2046_v28 }
 0x132   :  { %1522 = vmatprep.subr.bf16.mxu0 %v2052_v30 }
 0x135   :  { %1524 = vmatpush1.bf16.msra.mxu0 %v2059_v35 }
 0x136   :  { %1526 = vmatprep.subr.bf16.mxu0 %v2063_v36 }
 0x139   :  { %1528 = vmatpush1.bf16.msra.mxu0 %v2067_v41 }
 0x13a   :  { %1530 = vmatprep.subr.bf16.mxu0 %v2071_v42 }
 0x13d   :  { %1532 = vmatpush1.bf16.msra.mxu0 %v2075_v47 }
 0x13e   :  { %1534 = vmatprep.subr.bf16.mxu0 %v2079_v48 }
 0x141   :  { %1536 = vmatpush1.bf16.msra.mxu0 %v2083_v53 }
 0x142   :  { %1538 = vmatprep.subr.bf16.mxu0 %v2087_v54 }
 0x145   :  { %1540 = vmatpush1.bf16.msra.mxu0 %v2091_v59 }
 0x146   :  { %1542 = vmatprep.subr.bf16.mxu0 %v2095_v60 }
 0x149   :  { %1544 = vmatpush1.bf16.msra.mxu0 %v2099_v63 }
 0x14a   :  { %1586 = vmatprep.subr.bf16.mxu0 %v2020_v4 }
 0x1f7   :  { %v424_v51 = vpop.f32.mrb[8].mxu0 }
 0x1f8   :  { %v425_v52 = vadd.f32 %v424_v51, %v2168_v18  ;;  %v426_v55 = vpop.f32.mrb[9].mxu0  ;;  %v631_v51 = vrot.slane %v1345_v49, %v2160_v13 }
 0x1f9   :  { %v427_v58 = vadd.f32 %v426_v55, %v2171_v19 }
 0x1fa   :  { %v431_v61 = vadd.f32 %v429_v57, %v425_v52 }
 0x1fb   :  { %v432_v62 = vadd.f32 %v430_v56, %v427_v58 }
 0x1fc   :  { %1873 = vtanh.f32 %v431_v61  ;;  %v715_v61 = vld [vmem:[#allocation2 + $0x48] sm:$0xff] }
 0x1fd   :  { %1875 = vtanh.f32 %v432_v62  ;;  %v714_v62 = vld [vmem:[#allocation2 + $0x40] sm:$0xff] }
 0x206   :  { %v1874_v3 = vpop.eup %1873 }
 0x207   :  { %v1876_v5 = vpop.eup %1875  ;;  %v448_v7 = vmul.f32 %v1874_v3, %v441_v2 }
 0x208   :  { %v449_v6 = vmul.f32 %v1876_v5, %v445_v1 }
 0x20a   :  { %1342 = vmatprep.mubr.msk.f32.mxu1 %vm42_vm0, %v449_v6 }
 0x20b   :  { %518 = vmatmul.mubr.f32.vlgmr.msra.gmra.mrb[2].mxu1 %v448_v7 }
 0x20c   :  { %1548 = vmatpush1.bf16.msra.mxu1 %v2022_v8 }
 0x20d   :  { %1550 = vmatprep.subr.bf16.mxu1 %v2024_v9 }
 0x210   :  { %1552 = vmatpush1.bf16.msra.mxu1 %v2028_v14 }
 0x211   :  { %1554 = vmatprep.subr.bf16.mxu1 %v2031_v15 }
 0x214   :  { %1556 = vmatpush1.bf16.msra.mxu1 %v2034_v20 }
 0x215   :  { %1558 = vmatprep.subr.bf16.mxu1 %v2037_v21 }
 0x218   :  { %1560 = vmatpush1.bf16.msra.mxu1 %v2046_v28 }
 0x219   :  { %1562 = vmatprep.subr.bf16.mxu1 %v2052_v30 }
 0x21c   :  { %1564 = vmatpush1.bf16.msra.mxu1 %v2059_v35 }
 0x21d   :  { %1566 = vmatprep.subr.bf16.mxu1 %v2063_v36 }
 0x220   :  { %1568 = vmatpush1.bf16.msra.mxu1 %v2067_v41 }
 0x221   :  { %1570 = vmatprep.subr.bf16.mxu1 %v2071_v42 }
 0x224   :  { %1572 = vmatpush1.bf16.msra.mxu1 %v2075_v47 }
 0x225   :  { %1574 = vmatprep.subr.bf16.mxu1 %v2079_v48 }
 0x228   :  { %1576 = vmatpush1.bf16.msra.mxu1 %v2083_v53 }
 0x229   :  { %1578 = vmatprep.subr.bf16.mxu1 %v2087_v54 }
 0x22c   :  { %1580 = vmatpush1.bf16.msra.mxu1 %v2091_v59 }
 0x22d   :  { %1582 = vmatprep.subr.bf16.mxu1 %v2095_v60 }
 0x230   :  { %1584 = vmatpush1.bf16.msra.mxu1 %v2099_v63 }
 0x231   :  { %1626 = vmatprep.subr.bf16.mxu1 %v2020_v4 }
 0x2de   :  { %v519_v10 = vpop.f32.mrb[2].mxu1 }
 0x2df   :  { %v520_v11 = vadd.f32 %v519_v10, %v2168_v18  ;;  %v521_v12 = vpop.f32.mrb[3].mxu1 }
 0x2e0   :  { %v522_v23 = vadd.f32 %v521_v12, %v2171_v19  ;;  %v801_v12 = vld [vmem:[#allocation2 + $0x50] sm:$0xff] }
 0x2e1   :  { %v526_v24 = vadd.f32 %v524_v22, %v520_v11  ;;  %v802_v11 = vld [vmem:[#allocation2 + $0x58] sm:$0xff] }
 0x2e2   :  { %v527_v25 = vadd.f32 %v525_v16, %v522_v23 }
 0x2e3   :  { %1877 = vtanh.f32 %v526_v24  ;;  %v1347_v24 = vld [vmem:[%s2447_s5] ss:$0 sm:$0xff] }
 0x2e4   :  { %1879 = vtanh.f32 %v527_v25  ;;  %v1349_v25 = vld [vmem:[%s2447_s5 + $0x1] ss:$0 sm:$0xff] }
 0x2ed   :  { %v1878_v31 = vpop.eup %1877 }
 0x2ee   :  { %v1880_v32 = vpop.eup %1879  ;;  %v543_v34 = vmul.f32 %v1878_v31, %v536_v29 }
 0x2ef   :  { %v544_v33 = vmul.f32 %v1880_v32, %v540_v27 }
 0x2f1   :  { %1344 = vmatprep.mubr.msk.f32.mxu0 %vm42_vm0, %v544_v33 }
 0x2f2   :  { %613 = vmatmul.mubr.f32.vlgmr.msra.gmra.mrb[10].mxu0 %v543_v34 }
 0x2f3   :  { %1588 = vmatpush1.bf16.msra.mxu0 %v2022_v8 }
 0x2f4   :  { %1590 = vmatprep.subr.bf16.mxu0 %v2024_v9 }
 0x2f7   :  { %1592 = vmatpush1.bf16.msra.mxu0 %v2028_v14 }
 0x2f8   :  { %1594 = vmatprep.subr.bf16.mxu0 %v2031_v15 }
 0x2fb   :  { %1596 = vmatpush1.bf16.msra.mxu0 %v2034_v20 }
 0x2fc   :  { %1598 = vmatprep.subr.bf16.mxu0 %v2037_v21 }
 0x2ff   :  { %1600 = vmatpush1.bf16.msra.mxu0 %v2046_v28 }
 0x300   :  { %1602 = vmatprep.subr.bf16.mxu0 %v2052_v30 }
 0x303   :  { %1604 = vmatpush1.bf16.msra.mxu0 %v2059_v35 }
 0x304   :  { %1606 = vmatprep.subr.bf16.mxu0 %v2063_v36 }
 0x307   :  { %1608 = vmatpush1.bf16.msra.mxu0 %v2067_v41 }
 0x308   :  { %1610 = vmatprep.subr.bf16.mxu0 %v2071_v42 }
 0x30b   :  { %1612 = vmatpush1.bf16.msra.mxu0 %v2075_v47 }
 0x30c   :  { %1614 = vmatprep.subr.bf16.mxu0 %v2079_v48 }
 0x30f   :  { %1616 = vmatpush1.bf16.msra.mxu0 %v2083_v53 }
 0x310   :  { %1618 = vmatprep.subr.bf16.mxu0 %v2087_v54 }
 0x313   :  { %1620 = vmatpush1.bf16.msra.mxu0 %v2091_v59 }
 0x314   :  { %1622 = vmatprep.subr.bf16.mxu0 %v2095_v60 }
 0x317   :  { %1624 = vmatpush1.bf16.msra.mxu0 %v2099_v63 }
 0x318   :  { %1666 = vmatprep.subr.bf16.mxu0 %v2020_v4 }
 0x3c5   :  { %v614_v37 = vpop.f32.mrb[10].mxu0 }
 0x3c6   :  { %v615_v38 = vadd.f32 %v614_v37, %v2168_v18  ;;  %v616_v39 = vpop.f32.mrb[11].mxu0 }
 0x3c7   :  { %v617_v44 = vadd.f32 %v616_v39, %v2171_v19  ;;  %v888_v39 = vld [vmem:[#allocation2 + $0x60] sm:$0xff] }
 0x3c8   :  { %v621_v45 = vadd.f32 %v619_v43, %v615_v38  ;;  %v889_v38 = vld [vmem:[#allocation2 + $0x68] sm:$0xff] }
 0x3c9   :  { %v622_v46 = vadd.f32 %v620_v40, %v617_v44 }
 0x3ca   :  { %1881 = vtanh.f32 %v621_v45  ;;  %v1351_v45 = vld [vmem:[%s2447_s5 + $0x2] ss:$0 sm:$0xff] }
 0x3cb   :  { %1883 = vtanh.f32 %v622_v46 }
 0x3d4   :  { %v1882_v52 = vpop.eup %1881 }
 0x3d5   :  { %v1884_v55 = vpop.eup %1883  ;;  %v638_v57 = vmul.f32 %v1882_v52, %v631_v51 }
 0x3d6   :  { %v639_v56 = vmul.f32 %v1884_v55, %v635_v50 }
 0x3d8   :  { %1346 = vmatprep.mubr.msk.f32.mxu1 %vm42_vm0, %v639_v56 }
 0x3d9   :  { %708 = vmatmul.mubr.f32.vlgmr.msra.gmra.mrb[4].mxu1 %v638_v57  ;;  %v976_v57 = vld [vmem:[#allocation2 + $0x78] sm:$0xff] }
 0x3da   :  { %1628 = vmatpush1.bf16.msra.mxu1 %v2022_v8 }
 0x3db   :  { %1630 = vmatprep.subr.bf16.mxu1 %v2024_v9 }
 0x3de   :  { %1632 = vmatpush1.bf16.msra.mxu1 %v2028_v14 }
 0x3df   :  { %1634 = vmatprep.subr.bf16.mxu1 %v2031_v15 }
 0x3e2   :  { %1636 = vmatpush1.bf16.msra.mxu1 %v2034_v20 }
 0x3e3   :  { %1638 = vmatprep.subr.bf16.mxu1 %v2037_v21 }
 0x3e6   :  { %1640 = vmatpush1.bf16.msra.mxu1 %v2046_v28 }
 0x3e7   :  { %1642 = vmatprep.subr.bf16.mxu1 %v2052_v30 }
 0x3ea   :  { %1644 = vmatpush1.bf16.msra.mxu1 %v2059_v35 }
 0x3eb   :  { %1646 = vmatprep.subr.bf16.mxu1 %v2063_v36 }
 0x3ee   :  { %1648 = vmatpush1.bf16.msra.mxu1 %v2067_v41 }
 0x3ef   :  { %1650 = vmatprep.subr.bf16.mxu1 %v2071_v42 }
 0x3f2   :  { %1652 = vmatpush1.bf16.msra.mxu1 %v2075_v47 }
 0x3f3   :  { %1654 = vmatprep.subr.bf16.mxu1 %v2079_v48 }
 0x3f6   :  { %1656 = vmatpush1.bf16.msra.mxu1 %v2083_v53 }
 0x3f7   :  { %1658 = vmatprep.subr.bf16.mxu1 %v2087_v54 }
 0x3fa   :  { %1660 = vmatpush1.bf16.msra.mxu1 %v2091_v59 }
 0x3fb   :  { %1662 = vmatprep.subr.bf16.mxu1 %v2095_v60 }
 0x3fe   :  { %1664 = vmatpush1.bf16.msra.mxu1 %v2099_v63 }
 0x3ff   :  { %1706 = vmatprep.subr.bf16.mxu1 %v2020_v4 }
 0x4ac   :  { %v709_v13 = vpop.f32.mrb[4].mxu1 }
 0x4ad   :  { %v710_v17 = vadd.f32 %v709_v13, %v2168_v18  ;;  %v711_v58 = vpop.f32.mrb[5].mxu1  ;;  %v975_v13 = vld [vmem:[#allocation2 + $0x70] sm:$0xff] }
 0x4ae   :  { %v712_v0 = vadd.f32 %v711_v58, %v2171_v19 }
 0x4af   :  { %v716_v1 = vadd.f32 %v714_v62, %v710_v17  ;;  %v1353_v62 = vld [vmem:[%s2447_s5 + $0x3] ss:$0 sm:$0xff] }
 0x4b0   :  { %v717_v2 = vadd.f32 %v715_v61, %v712_v0 }
 0x4b2   :  { %1885 = vtanh.f32 %v717_v2 }
 0x4b3   :  { %1887 = vtanh.f32 %v716_v1 }
 0x4bc   :  { %v1886_v3 = vpop.eup %1885 }
 0x4bd   :  { %v1888_v5 = vpop.eup %1887  ;;  %1348 = vmatprep.mubr.msk.f32.mxu0 %vm42_vm0, %v1886_v3  ;;  %v725_v29 = vmul.f32 %v1886_v3, %v1347_v24  ;;  %v1361_v24 = vld [vmem:[%s2447_s5 + $0x7] ss:$0 sm:$0xff] }
 0x4be   :  { %795 = vmatmul.mubr.f32.vlgmr.msra.gmra.mrb[12].mxu0 %v1888_v5 }
 0x4bf   :  { %1668 = vmatpush1.bf16.msra.mxu0 %v2022_v8 }
 0x4c0   :  { %1670 = vmatprep.subr.bf16.mxu0 %v2024_v9 }
 0x4c3   :  { %1672 = vmatpush1.bf16.msra.mxu0 %v2028_v14 }
 0x4c4   :  { %1674 = vmatprep.subr.bf16.mxu0 %v2031_v15 }
 0x4c7   :  { %1676 = vmatpush1.bf16.msra.mxu0 %v2034_v20 }
 0x4c8   :  { %1678 = vmatprep.subr.bf16.mxu0 %v2037_v21 }
 0x4cb   :  { %1680 = vmatpush1.bf16.msra.mxu0 %v2046_v28 }
 0x4cc   :  { %1682 = vmatprep.subr.bf16.mxu0 %v2052_v30 }
 0x4cf   :  { %1684 = vmatpush1.bf16.msra.mxu0 %v2059_v35 }
 0x4d0   :  { %1686 = vmatprep.subr.bf16.mxu0 %v2063_v36 }
 0x4d3   :  { %1688 = vmatpush1.bf16.msra.mxu0 %v2067_v41 }
 0x4d4   :  { %1690 = vmatprep.subr.bf16.mxu0 %v2071_v42 }
 0x4d7   :  { %1692 = vmatpush1.bf16.msra.mxu0 %v2075_v47 }
 0x4d8   :  { %1694 = vmatprep.subr.bf16.mxu0 %v2079_v48 }
 0x4db   :  { %1696 = vmatpush1.bf16.msra.mxu0 %v2083_v53 }
 0x4dc   :  { %1698 = vmatprep.subr.bf16.mxu0 %v2087_v54 }
 0x4df   :  { %1700 = vmatpush1.bf16.msra.mxu0 %v2091_v59 }
 0x4e0   :  { %1702 = vmatprep.subr.bf16.mxu0 %v2095_v60 }
 0x4e3   :  { %1704 = vmatpush1.bf16.msra.mxu0 %v2099_v63 }
 0x4e4   :  { %1746 = vmatprep.subr.bf16.mxu0 %v2020_v4 }
 0x591   :  { %v796_v6 = vpop.f32.mrb[12].mxu0 }
 0x592   :  { %v797_v7 = vadd.f32 %v796_v6, %v2168_v18  ;;  %v798_v10 = vpop.f32.mrb[13].mxu0 }
 0x593   :  { %v799_v16 = vadd.f32 %v798_v10, %v2171_v19  ;;  %v1355_v10 = vld [vmem:[%s2447_s5 + $0x4] ss:$0 sm:$0xff] }
 0x594   :  { %v803_v22 = vadd.f32 %v801_v12, %v797_v7 }
 0x595   :  { %v804_v23 = vadd.f32 %v802_v11, %v799_v16 }
 0x597   :  { %1889 = vtanh.f32 %v804_v23 }
 0x598   :  { %1891 = vtanh.f32 %v803_v22 }
 0x5a1   :  { %v1890_v26 = vpop.eup %1889 }
 0x5a2   :  { %v1892_v27 = vpop.eup %1891  ;;  %v812_v31 = vmul.f32 %v1890_v26, %v1349_v25  ;;  %1350 = vmatprep.mubr.msk.f32.mxu1 %vm42_vm0, %v1890_v26 }
 0x5a3   :  { %882 = vmatmul.mubr.f32.vlgmr.msra.gmra.mrb[6].mxu1 %v1892_v27 }
 0x5a4   :  { %1708 = vmatpush1.bf16.msra.mxu1 %v2022_v8  ;;  %v813_v32 = vadd.f32 %v812_v31, %v725_v29  ;;  %v1322_v31 = vstv %s2448_s6 }
 0x5a5   :  { %1710 = vmatprep.subr.bf16.mxu1 %v2024_v9 }
 0x5a8   :  { %1712 = vmatpush1.bf16.msra.mxu1 %v2028_v14 }
 0x5a9   :  { %1714 = vmatprep.subr.bf16.mxu1 %v2031_v15 }
 0x5ac   :  { %1716 = vmatpush1.bf16.msra.mxu1 %v2034_v20 }
 0x5ad   :  { %1718 = vmatprep.subr.bf16.mxu1 %v2037_v21 }
 0x5b0   :  { %1720 = vmatpush1.bf16.msra.mxu1 %v2046_v28 }
 0x5b1   :  { %1722 = vmatprep.subr.bf16.mxu1 %v2052_v30 }
 0x5b4   :  { %1724 = vmatpush1.bf16.msra.mxu1 %v2059_v35 }
 0x5b5   :  { %1726 = vmatprep.subr.bf16.mxu1 %v2063_v36 }
 0x5b8   :  { %1728 = vmatpush1.bf16.msra.mxu1 %v2067_v41 }
 0x5b9   :  { %1730 = vmatprep.subr.bf16.mxu1 %v2071_v42 }
 0x5bc   :  { %1732 = vmatpush1.bf16.msra.mxu1 %v2075_v47 }
 0x5bd   :  { %1734 = vmatprep.subr.bf16.mxu1 %v2079_v48 }
 0x5c0   :  { %1736 = vmatpush1.bf16.msra.mxu1 %v2083_v53 }
 0x5c1   :  { %1738 = vmatprep.subr.bf16.mxu1 %v2087_v54 }
 0x5c4   :  { %1740 = vmatpush1.bf16.msra.mxu1 %v2091_v59 }
 0x5c5   :  { %1742 = vmatprep.subr.bf16.mxu1 %v2095_v60 }
 0x5c8   :  { %1744 = vmatpush1.bf16.msra.mxu1 %v2099_v63 }
 0x5c9   :  { %1786 = vmatprep.subr.bf16.mxu1 %v2020_v4 }
 0x676   :  { %v883_v33 = vpop.f32.mrb[6].mxu1 }
 0x677   :  { %v884_v34 = vadd.f32 %v883_v33, %v2168_v18  ;;  %v885_v37 = vpop.f32.mrb[7].mxu1 }
 0x678   :  { %v886_v40 = vadd.f32 %v885_v37, %v2171_v19 }
 0x679   :  { %v890_v43 = vadd.f32 %v888_v39, %v884_v34 }
 0x67a   :  { %v891_v44 = vadd.f32 %v889_v38, %v886_v40 }
 0x67c   :  { %1893 = vtanh.f32 %v891_v44 }
 0x67d   :  { %1895 = vtanh.f32 %v890_v43 }
 0x686   :  { %v1894_v46 = vpop.eup %1893 }
 0x687   :  { %v1896_v49 = vpop.eup %1895  ;;  %1352 = vmatprep.mubr.msk.f32.mxu0 %vm42_vm0, %v1894_v46  ;;  %v899_v50 = vmul.f32 %v1894_v46, %v1351_v45 }
 0x688   :  { %969 = vmatmul.mubr.f32.vlgmr.msra.gmra.mrb[14].mxu0 %v1896_v49 }
 0x689   :  { %1748 = vmatpush1.bf16.msra.mxu0 %v2022_v8  ;;  %v900_v51 = vadd.f32 %v899_v50, %v813_v32 }
 0x68a   :  { %1750 = vmatprep.subr.bf16.mxu0 %v2024_v9 }
 0x68d   :  { %1752 = vmatpush1.bf16.msra.mxu0 %v2028_v14 }
 0x68e   :  { %1754 = vmatprep.subr.bf16.mxu0 %v2031_v15 }
 0x691   :  { %1756 = vmatpush1.bf16.msra.mxu0 %v2034_v20 }
 0x692   :  { %1758 = vmatprep.subr.bf16.mxu0 %v2037_v21 }
 0x695   :  { %1760 = vmatpush1.bf16.msra.mxu0 %v2046_v28 }
 0x696   :  { %1762 = vmatprep.subr.bf16.mxu0 %v2052_v30 }
 0x699   :  { %1764 = vmatpush1.bf16.msra.mxu0 %v2059_v35 }
 0x69a   :  { %1766 = vmatprep.subr.bf16.mxu0 %v2063_v36 }
 0x69d   :  { %1768 = vmatpush1.bf16.msra.mxu0 %v2067_v41 }
 0x69e   :  { %1770 = vmatprep.subr.bf16.mxu0 %v2071_v42 }
 0x6a1   :  { %1772 = vmatpush1.bf16.msra.mxu0 %v2075_v47 }
 0x6a2   :  { %1774 = vmatprep.subr.bf16.mxu0 %v2079_v48 }
 0x6a5   :  { %1776 = vmatpush1.bf16.msra.mxu0 %v2083_v53 }
 0x6a6   :  { %1778 = vmatprep.subr.bf16.mxu0 %v2087_v54 }
 0x6a9   :  { %1780 = vmatpush1.bf16.msra.mxu0 %v2091_v59 }
 0x6aa   :  { %1782 = vmatprep.subr.bf16.mxu0 %v2095_v60 }
 0x6ad   :  { %1784 = vmatpush1.bf16.msra.mxu0 %v2099_v63 }
 0x6ae   :  { %1826 = vmatprep.subr.bf16.mxu0 %v2020_v4 }
 0x75b   :  { %v970_v52 = vpop.f32.mrb[14].mxu0 }
 0x75c   :  { %v971_v55 = vadd.f32 %v970_v52, %v2168_v18  ;;  %v972_v56 = vpop.f32.mrb[15].mxu0 }
 0x75d   :  { %v973_v17 = vadd.f32 %v972_v56, %v2171_v19 }
 0x75e   :  { %v977_v58 = vadd.f32 %v975_v13, %v971_v55 }
 0x75f   :  { %v978_v61 = vadd.f32 %v976_v57, %v973_v17 }
 0x761   :  { %1897 = vtanh.f32 %v978_v61 }
 0x762   :  { %1899 = vtanh.f32 %v977_v58 }
 0x76b   :  { %v1898_v0 = vpop.eup %1897 }
 0x76c   :  { %v1900_v1 = vpop.eup %1899  ;;  %1354 = vmatprep.mubr.msk.f32.mxu1 %vm42_vm0, %v1898_v0  ;;  %v986_v4 = vmul.f32 %v1898_v0, %v1353_v62 }
 0x76d   :  { %1056 = vmatmul.mubr.f32.vlgmr.msra.gmra.mrb[8].mxu1 %v1900_v1 }
 0x76e   :  { %1788 = vmatpush1.bf16.msra.mxu1 %v2022_v8  ;;  %v987_v2 = vadd.f32 %v986_v4, %v900_v51 }
 0x76f   :  { %1790 = vmatprep.subr.bf16.mxu1 %v2024_v9 }
 0x772   :  { %1792 = vmatpush1.bf16.msra.mxu1 %v2028_v14 }
 0x773   :  { %1794 = vmatprep.subr.bf16.mxu1 %v2031_v15 }
 0x776   :  { %1796 = vmatpush1.bf16.msra.mxu1 %v2034_v20 }
 0x777   :  { %1798 = vmatprep.subr.bf16.mxu1 %v2037_v21 }
 0x77a   :  { %1800 = vmatpush1.bf16.msra.mxu1 %v2046_v28 }
 0x77b   :  { %1802 = vmatprep.subr.bf16.mxu1 %v2052_v30 }
 0x77e   :  { %1804 = vmatpush1.bf16.msra.mxu1 %v2059_v35 }
 0x77f   :  { %1806 = vmatprep.subr.bf16.mxu1 %v2063_v36 }
 0x782   :  { %1808 = vmatpush1.bf16.msra.mxu1 %v2067_v41 }
 0x783   :  { %1810 = vmatprep.subr.bf16.mxu1 %v2071_v42 }
 0x786   :  { %1812 = vmatpush1.bf16.msra.mxu1 %v2075_v47 }
 0x787   :  { %1814 = vmatprep.subr.bf16.mxu1 %v2079_v48 }
 0x78a   :  { %1816 = vmatpush1.bf16.msra.mxu1 %v2083_v53 }
 0x78b   :  { %1818 = vmatprep.subr.bf16.mxu1 %v2087_v54 }
 0x78e   :  { %1820 = vmatpush1.bf16.msra.mxu1 %v2091_v59 }
 0x78f   :  { %1822 = vmatprep.subr.bf16.mxu1 %v2095_v60 }
 0x792   :  { %1824 = vmatpush1.bf16.msra.mxu1 %v2099_v63 }
 0x840   :  { %v1057_v3 = vpop.f32.mrb[8].mxu1 }
 0x841   :  { %v1058_v5 = vadd.f32 %v1057_v3, %v2168_v18  ;;  %v1059_v6 = vpop.f32.mrb[9].mxu1 }
 0x842   :  { %v1060_v7 = vadd.f32 %v1059_v6, %v2171_v19 }
 0x844   :  { %1901 = vtanh.f32 %v1060_v7 }
 0x845   :  { %1903 = vtanh.f32 %v1058_v5 }
 0x84e   :  { %v1902_v11 = vpop.eup %1901 }
 0x84f   :  { %v1904_v12 = vpop.eup %1903  ;;  %1356 = vmatprep.mubr.msk.f32.mxu0 %vm42_vm0, %v1902_v11  ;;  %v1069_v16 = vmul.f32 %v1902_v11, %v1355_v10 }
 0x850   :  { %1139 = vmatmul.mubr.f32.vlgmr.msra.gmra.mrb[16].mxu0 %v1904_v12 }
 0x851   :  { %1828 = vmatpush1.bf16.msra.mxu0 %v2022_v8  ;;  %v1070_v22 = vadd.f32 %v1069_v16, %v987_v2 }
 0x852   :  { %1830 = vmatprep.subr.bf16.mxu0 %v2024_v9 }
 0x855   :  { %1832 = vmatpush1.bf16.msra.mxu0 %v2028_v14 }
 0x856   :  { %1834 = vmatprep.subr.bf16.mxu0 %v2031_v15 }
 0x859   :  { %1836 = vmatpush1.bf16.msra.mxu0 %v2034_v20  ;;  %v1357_v20 = vld [vmem:[%s2447_s5 + $0x5] ss:$0 sm:$0xff] }
 0x85a   :  { %1838 = vmatprep.subr.bf16.mxu0 %v2037_v21 }
 0x85d   :  { %1840 = vmatpush1.bf16.msra.mxu0 %v2046_v28 }
 0x85e   :  { %1842 = vmatprep.subr.bf16.mxu0 %v2052_v30 }
 0x861   :  { %1844 = vmatpush1.bf16.msra.mxu0 %v2059_v35 }
 0x862   :  { %1846 = vmatprep.subr.bf16.mxu0 %v2063_v36 }
 0x865   :  { %1848 = vmatpush1.bf16.msra.mxu0 %v2067_v41 }
 0x866   :  { %1850 = vmatprep.subr.bf16.mxu0 %v2071_v42 }
 0x869   :  { %1852 = vmatpush1.bf16.msra.mxu0 %v2075_v47 }
 0x86a   :  { %1854 = vmatprep.subr.bf16.mxu0 %v2079_v48  ;;  %v1359_v48 = vld [vmem:[%s2447_s5 + $0x6] ss:$0 sm:$0xff] }
 0x86d   :  { %1856 = vmatpush1.bf16.msra.mxu0 %v2083_v53 }
 0x86e   :  { %1858 = vmatprep.subr.bf16.mxu0 %v2087_v54 }
 0x871   :  { %1860 = vmatpush1.bf16.msra.mxu0 %v2091_v59 }
 0x872   :  { %1862 = vmatprep.subr.bf16.mxu0 %v2095_v60 }
 0x875   :  { %1864 = vmatpush1.bf16.msra.mxu0 %v2099_v63 }
 0x923   :  { %v1140_v8 = vpop.f32.mrb[16].mxu0 }
 0x924   :  { %v1141_v9 = vadd.f32 %v1140_v8, %v2168_v18  ;;  %v1142_v14 = vpop.f32.mrb[17].mxu0 }
 0x925   :  { %v1143_v15 = vadd.f32 %v1142_v14, %v2171_v19 }
 0x927   :  { %1905 = vtanh.f32 %v1143_v15 }
 0x928   :  { %1907 = vtanh.f32 %v1141_v9 }
 0x931   :  { %v1906_v21 = vpop.eup %1905 }
 0x932   :  { %v1908_v28 = vpop.eup %1907  ;;  %1358 = vmatprep.mubr.msk.f32.mxu1 %vm42_vm0, %v1906_v21  ;;  %v1152_v30 = vmul.f32 %v1906_v21, %v1357_v20 }
 0x933   :  { %1222 = vmatmul.mubr.f32.vlgmr.msra.gmra.mrb[10].mxu1 %v1908_v28 }
 0x934   :  { %v1153_v35 = vadd.f32 %v1152_v30, %v1070_v22 }
 0xa06   :  { %v1223_v36 = vpop.f32.mrb[10].mxu1 }
 0xa07   :  { %v1224_v41 = vadd.f32 %v1223_v36, %v2168_v18  ;;  %v1225_v42 = vpop.f32.mrb[11].mxu1 }
 0xa08   :  { %v1226_v47 = vadd.f32 %v1225_v42, %v2171_v19 }
 0xa0a   :  { %1909 = vtanh.f32 %v1226_v47 }
 0xa0b   :  { %1911 = vtanh.f32 %v1224_v41 }
 0xa14   :  { %v1910_v53 = vpop.eup %1909 }
 0xa15   :  { %v1912_v54 = vpop.eup %1911  ;;  %1360 = vmatprep.mubr.msk.f32.mxu0 %vm42_vm0, %v1910_v53  ;;  %v1235_v59 = vmul.f32 %v1910_v53, %v1359_v48 }
 0xa16   :  { %1305 = vmatmul.mubr.f32.vlgmr.msra.gmra.mrb[18].mxu0 %v1912_v54 }
 0xa17   :  { %v1236_v60 = vadd.f32 %v1235_v59, %v1153_v35 }
 0xae9   :  { %v1306_v63 = vpop.f32.mrb[18].mxu0 }
 0xaea   :  { %v1307_v23 = vpop.f32.mrb[19].mxu0 }
 0xaeb   :  { %v1308_v18 = vadd.f32 %v1307_v23, %v2171_v19 }
 0xaed   :  { %1913 = vtanh.f32 %v1308_v18 }
 0xaf7   :  { %v1914_v25 = vpop.eup %1913 }
 0xaf8   :  { %v1316_v26 = vmul.f32 %v1914_v25, %v1361_v24 }
 0xafa   :  { %v1317_v27 = vadd.f32 %v1316_v26, %v1236_v60 }
 0xafc   :  { %v1318_v29 = vsel %vm42_vm0, %v1317_v27, 0.0 }
 0xafd   :  { %1319 = vadd.xlane.f32.xlu0 %v1318_v29 }
 0xb8a   :  { %v1320_v32 = vpop.xlane.xlu0 %1319 }
 0xb8b   :  { %v1323_v33 = vadd.f32 %v1322_v31, %v1320_v32 }
 0xb8d   :  { %1325 = vst.msk [vmem:[%s2449_s7] sm:$0xff] %vm1324_vm3, %v1323_v33 }
 0xb8e   :  { %1330 = vsyncpa [#allocation5], 1 }

</bundles_post_ra>
